<compile_context>
chip_gen: v7x
topology: tpu7x:2x2x1
jax: 0.10.0
libtpu: 0.0.40
codegen_flags: <defaults>
</compile_context>

<pallas_src>
from functools import partial

import jax
import jax.numpy as jnp
from jax import lax
from jax.experimental import pallas as pl
from jax.experimental.pallas import tpu as pltpu


# ----------------------------------------------------------------------------
# Device-side (JAX) distance-weighted triplet sampling
# (mirrors Sampler.distanceweightedsampling; runs as ordinary XLA ops)
# ----------------------------------------------------------------------------
def _pdist_jax(A, eps=1e-4):
    prod = A @ A.T
    norm = jnp.diag(prod)[:, None]
    res = jnp.clip(norm + norm.T - 2.0 * prod, 0.0, None)
    return jnp.sqrt(jnp.clip(res, eps, None))


def distance_weighted_sampling_jax(key, batch, labels, lower_cutoff=0.5):
    """Returns (anchor_idx, positive_idx, negative_idx), each shape (BS,)."""
    bs, dim = batch.shape
    dist = jnp.clip(_pdist_jax(batch), lower_cutoff, None)          # (BS, BS)
    same = labels[:, None] == labels[None, :]                        # (BS, BS)

    # inverse sphere distance log-probabilities (clamped for robustness)
    log_q = ((2.0 - float(dim)) * jnp.log(dist)
             - (float(dim - 3) / 2.0)
             * jnp.log(jnp.clip(1.0 - 0.25 * dist * dist, 1e-8, None)))

    k_neg, k_pos = jax.random.split(key)

    # negatives: categorical over q restricted to different-class columns
    # (categorical over these logits == normalizing q with same-class zeroed)
    neg_logits = jnp.where(same, -jnp.inf, log_q)
    negatives = jax.random.categorical(k_neg, neg_logits, axis=-1)

    # positives: uniform over same-class columns, excluding self
    pos_mask = same & ~jnp.eye(bs, dtype=bool)
    pos_logits = jnp.where(pos_mask, 0.0, -jnp.inf)
    positives = jax.random.categorical(k_pos, pos_logits, axis=-1)

    anchors = jnp.arange(bs, dtype=jnp.int32)
    return anchors, positives.astype(jnp.int32), negatives.astype(jnp.int32)


# ----------------------------------------------------------------------------
# Pallas kernel: fused gather + distances + margin hinge + batch-avg reduction
# ----------------------------------------------------------------------------
def _margin_loss_kernel(a_idx_ref, p_idx_ref, n_idx_ref, beta_ref, emb_ref,
                        out_ref, *, margin, n_triplets):
    # a_idx/p_idx/n_idx/beta: (T,) in SMEM; emb: (BS, D) in VMEM; out: (1,1) SMEM
    def body(t, carry):
        total, count = carry
        ia = a_idx_ref[t]
        ip = p_idx_ref[t]
        ineg = n_idx_ref[t]
        # In-kernel row gather from the single VMEM copy of the batch.
        a = emb_ref[pl.ds(ia, 1), :].astype(jnp.float32)             # (1, D)
        p = emb_ref[pl.ds(ip, 1), :].astype(jnp.float32)             # (1, D)
        n = emb_ref[pl.ds(ineg, 1), :].astype(jnp.float32)           # (1, D)

        d_ap = jnp.sqrt(jnp.sum(jnp.square(a - p)) + 1e-8)
        d_an = jnp.sqrt(jnp.sum(jnp.square(a - n)) + 1e-8)

        b = beta_ref[t]
        pos_loss = jnp.maximum(d_ap - b + margin, 0.0)
        neg_loss = jnp.maximum(b - d_an + margin, 0.0)

        # modern-torch bool semantics: (pos>0) + (neg>0) == logical OR
        active = jnp.logical_or(pos_loss > 0.0, neg_loss > 0.0)
        return (total + pos_loss + neg_loss,
                count + active.astype(jnp.float32))

    total, count = lax.fori_loop(
        0, n_triplets, body,
        (jnp.float32(0.0), jnp.float32(0.0)),
        unroll=(n_triplets <= 32),
    )
    # count == 0 implies total == 0, so total / max(count, 1) matches
    # `sum if pair_count == 0 else sum / pair_count` exactly (and has no 0/0).
    out_ref[0, 0] = total / jnp.maximum(count, 1.0)


def margin_loss_pallas(emb, a_idx, p_idx, n_idx, beta_triplet, margin):
    T = a_idx.shape[0]
    kernel = partial(_margin_loss_kernel, margin=float(margin), n_triplets=T)
    out = pl.pallas_call(
        kernel,
        out_shape=jax.ShapeDtypeStruct((1, 1), jnp.float32),
        in_specs=[
            pl.BlockSpec(memory_space=pltpu.MemorySpace.SMEM),   # anchor idx
            pl.BlockSpec(memory_space=pltpu.MemorySpace.SMEM),   # positive idx
            pl.BlockSpec(memory_space=pltpu.MemorySpace.SMEM),   # negative idx
            pl.BlockSpec(memory_space=pltpu.MemorySpace.SMEM),   # per-triplet beta
            pl.BlockSpec(memory_space=pltpu.MemorySpace.VMEM),   # embeddings (BS, D)
        ],
        out_specs=pl.BlockSpec(memory_space=pltpu.MemorySpace.SMEM),
    )(a_idx, p_idx, n_idx, beta_triplet, emb)
    return out[0, 0]


# ----------------------------------------------------------------------------
# Full forward (sampling + kernel), single jitted device program
# ----------------------------------------------------------------------------
def _forward_impl(key, batch, labels, beta_table, *, margin):
    batch = batch.astype(jnp.float32)
    a_idx, p_idx, n_idx = distance_weighted_sampling_jax(key, batch, labels)
    # anchor-label class margins (beta); constant-beta uses a constant table.
    beta_triplet = jnp.take(beta_table, jnp.take(labels, a_idx), axis=0)
    return margin_loss_pallas(batch, a_idx, p_idx, n_idx,
                              beta_triplet.astype(jnp.float32), margin)


# ----------------------------------------------------------------------------
# MarginLoss module equivalent
# ----------------------------------------------------------------------------
class MarginLossJax:
    def __init__(self, margin=0.2, nu=0, beta=1.2, n_classes=100,
                 beta_constant=False, sampling_method='distance'):
        self.margin = float(margin)
        self.nu = nu                      # forward() does not use nu (matches torch module)
        self.n_classes = n_classes
        self.beta_constant = beta_constant
        self.beta_val = float(beta)
        # trainable class margins, deterministically initialized (ones * beta);
        # when beta_constant the same table is just a constant.
        self.beta = jnp.ones((n_classes,), jnp.float32) * self.beta_val
        # TODO(synk): only the 'distance' sampler is implemented on-device;
        # 'random'/'semihard' sampling would remain host-side combinatorics.
        self.sampling_method = sampling_method
        self._forward = jax.jit(partial(_forward_impl, margin=self.margin))

    def __call__(self, batch, labels, key):
        labels = jnp.asarray(labels, jnp.int32)
        return self._forward(key, batch, labels, self.beta)


if __name__ == "__main__":
    BS, D = 8, 32
    key = jax.random.PRNGKey(0)
    k_emb, k_sample = jax.random.split(key)

    emb = jax.random.normal(k_emb, (BS, D), dtype=jnp.float32)
    # L2-normalize embeddings (standard in metric learning; keeps pairwise
    # distances <= 2 so the distance-weighted sampler's log terms are defined).
    emb = emb / jnp.linalg.norm(emb, axis=-1, keepdims=True)

    labels = jnp.array([0, 0, 1, 1, 2, 2, 3, 3], dtype=jnp.int32)

    loss_fn = MarginLossJax(margin=0.2, beta=1.2, n_classes=100,
                            beta_constant=False, sampling_method='distance')
    loss = loss_fn(emb, labels, k_sample)
    loss = jax.block_until_ready(loss)
    assert bool(jnp.isfinite(loss))
    print("KERNEL_OK")
</pallas_src>

<mosaic_0001>
module attributes {stable_mosaic.version = 11 : i64} {
  func.func @_margin_loss_kernel(%arg0: memref<8xi32, #tpu.memory_space<smem>>, %arg1: memref<8xi32, #tpu.memory_space<smem>>, %arg2: memref<8xi32, #tpu.memory_space<smem>>, %arg3: memref<8xf32, #tpu.memory_space<smem>>, %arg4: memref<8x32xf32, #tpu.memory_space<vmem>>, %arg5: memref<1x1xf32, #tpu.memory_space<smem>>) attributes {dimension_semantics = [], scalar_prefetch = 0 : i64, scratch_operands = 0 : i64, tpu.core_type = #tpu.core_type<tc>} {
    %cst = arith.constant 0.000000e+00 : f32
    %cst_0 = arith.constant 0.000000e+00 : f32
    %c0_i32 = arith.constant 0 : i32
    %0 = arith.index_cast %c0_i32 : i32 to index
    %1 = memref.load %arg0[%0] : memref<8xi32, #tpu.memory_space<smem>>
    %2 = arith.index_cast %c0_i32 : i32 to index
    %3 = memref.load %arg1[%2] : memref<8xi32, #tpu.memory_space<smem>>
    %4 = arith.index_cast %c0_i32 : i32 to index
    %5 = memref.load %arg2[%4] : memref<8xi32, #tpu.memory_space<smem>>
    %6 = arith.index_cast %1 : i32 to index
    %c0 = arith.constant 0 : index
    %7 = vector.load %arg4[%6, %c0] : memref<8x32xf32, #tpu.memory_space<vmem>>, vector<1x32xf32>
    %8 = arith.index_cast %3 : i32 to index
    %c0_1 = arith.constant 0 : index
    %9 = vector.load %arg4[%8, %c0_1] : memref<8x32xf32, #tpu.memory_space<vmem>>, vector<1x32xf32>
    %10 = arith.index_cast %5 : i32 to index
    %c0_2 = arith.constant 0 : index
    %11 = vector.load %arg4[%10, %c0_2] : memref<8x32xf32, #tpu.memory_space<vmem>>, vector<1x32xf32>
    %12 = arith.subf %7, %9 : vector<1x32xf32>
    %13 = arith.mulf %12, %12 : vector<1x32xf32>
    %14 = vector.shape_cast %13 : vector<1x32xf32> to vector<1x1x32xf32>
    %cst_3 = arith.constant dense<0.000000e+00> : vector<1xf32>
    %15 = vector.multi_reduction <add>, %14, %cst_3 [1, 2] : vector<1x1x32xf32> to vector<1xf32>
    %16 = vector.shape_cast %15 : vector<1xf32> to vector<1x1x1xf32>
    %17 = vector.extract %16[0, 0, 0] : f32 from vector<1x1x1xf32>
    %cst_4 = arith.constant 9.99999993E-9 : f32
    %18 = arith.addf %17, %cst_4 : f32
    %19 = math.sqrt %18 : f32
    %20 = arith.subf %7, %11 : vector<1x32xf32>
    %21 = arith.mulf %20, %20 : vector<1x32xf32>
    %22 = vector.shape_cast %21 : vector<1x32xf32> to vector<1x1x32xf32>
    %cst_5 = arith.constant dense<0.000000e+00> : vector<1xf32>
    %23 = vector.multi_reduction <add>, %22, %cst_5 [1, 2] : vector<1x1x32xf32> to vector<1xf32>
    %24 = vector.shape_cast %23 : vector<1xf32> to vector<1x1x1xf32>
    %25 = vector.extract %24[0, 0, 0] : f32 from vector<1x1x1xf32>
    %cst_6 = arith.constant 9.99999993E-9 : f32
    %26 = arith.addf %25, %cst_6 : f32
    %27 = math.sqrt %26 : f32
    %28 = arith.index_cast %c0_i32 : i32 to index
    %29 = memref.load %arg3[%28] : memref<8xf32, #tpu.memory_space<smem>>
    %30 = arith.subf %19, %29 : f32
    %cst_7 = arith.constant 2.000000e-01 : f32
    %31 = arith.addf %30, %cst_7 : f32
    %cst_8 = arith.constant 0.000000e+00 : f32
    %32 = arith.maximumf %31, %cst_8 : f32
    %33 = arith.subf %29, %27 : f32
    %cst_9 = arith.constant 2.000000e-01 : f32
    %34 = arith.addf %33, %cst_9 : f32
    %cst_10 = arith.constant 0.000000e+00 : f32
    %35 = arith.maximumf %34, %cst_10 : f32
    %cst_11 = arith.constant 0.000000e+00 : f32
    %36 = arith.cmpf ogt, %32, %cst_11 : f32
    %cst_12 = arith.constant 0.000000e+00 : f32
    %37 = arith.cmpf ogt, %35, %cst_12 : f32
    %38 = arith.ori %36, %37 : i1
    %39 = arith.addf %cst, %32 : f32
    %40 = arith.addf %39, %35 : f32
    %41 = arith.extui %38 : i1 to i32
    %42 = arith.sitofp %41 : i32 to f32
    %43 = arith.addf %cst_0, %42 : f32
    %c1_i32 = arith.constant 1 : i32
    %44 = arith.index_cast %c1_i32 : i32 to index
    %45 = memref.load %arg0[%44] : memref<8xi32, #tpu.memory_space<smem>>
    %46 = arith.index_cast %c1_i32 : i32 to index
    %47 = memref.load %arg1[%46] : memref<8xi32, #tpu.memory_space<smem>>
    %48 = arith.index_cast %c1_i32 : i32 to index
    %49 = memref.load %arg2[%48] : memref<8xi32, #tpu.memory_space<smem>>
    %50 = arith.index_cast %45 : i32 to index
    %c0_13 = arith.constant 0 : index
    %51 = vector.load %arg4[%50, %c0_13] : memref<8x32xf32, #tpu.memory_space<vmem>>, vector<1x32xf32>
    %52 = arith.index_cast %47 : i32 to index
    %c0_14 = arith.constant 0 : index
    %53 = vector.load %arg4[%52, %c0_14] : memref<8x32xf32, #tpu.memory_space<vmem>>, vector<1x32xf32>
    %54 = arith.index_cast %49 : i32 to index
    %c0_15 = arith.constant 0 : index
    %55 = vector.load %arg4[%54, %c0_15] : memref<8x32xf32, #tpu.memory_space<vmem>>, vector<1x32xf32>
    %56 = arith.subf %51, %53 : vector<1x32xf32>
    %57 = arith.mulf %56, %56 : vector<1x32xf32>
    %58 = vector.shape_cast %57 : vector<1x32xf32> to vector<1x1x32xf32>
    %cst_16 = arith.constant dense<0.000000e+00> : vector<1xf32>
    %59 = vector.multi_reduction <add>, %58, %cst_16 [1, 2] : vector<1x1x32xf32> to vector<1xf32>
    %60 = vector.shape_cast %59 : vector<1xf32> to vector<1x1x1xf32>
    %61 = vector.extract %60[0, 0, 0] : f32 from vector<1x1x1xf32>
    %cst_17 = arith.constant 9.99999993E-9 : f32
    %62 = arith.addf %61, %cst_17 : f32
    %63 = math.sqrt %62 : f32
    %64 = arith.subf %51, %55 : vector<1x32xf32>
    %65 = arith.mulf %64, %64 : vector<1x32xf32>
    %66 = vector.shape_cast %65 : vector<1x32xf32> to vector<1x1x32xf32>
    %cst_18 = arith.constant dense<0.000000e+00> : vector<1xf32>
    %67 = vector.multi_reduction <add>, %66, %cst_18 [1, 2] : vector<1x1x32xf32> to vector<1xf32>
    %68 = vector.shape_cast %67 : vector<1xf32> to vector<1x1x1xf32>
    %69 = vector.extract %68[0, 0, 0] : f32 from vector<1x1x1xf32>
    %cst_19 = arith.constant 9.99999993E-9 : f32
    %70 = arith.addf %69, %cst_19 : f32
    %71 = math.sqrt %70 : f32
    %72 = arith.index_cast %c1_i32 : i32 to index
    %73 = memref.load %arg3[%72] : memref<8xf32, #tpu.memory_space<smem>>
    %74 = arith.subf %63, %73 : f32
    %cst_20 = arith.constant 2.000000e-01 : f32
    %75 = arith.addf %74, %cst_20 : f32
    %cst_21 = arith.constant 0.000000e+00 : f32
    %76 = arith.maximumf %75, %cst_21 : f32
    %77 = arith.subf %73, %71 : f32
    %cst_22 = arith.constant 2.000000e-01 : f32
    %78 = arith.addf %77, %cst_22 : f32
    %cst_23 = arith.constant 0.000000e+00 : f32
    %79 = arith.maximumf %78, %cst_23 : f32
    %cst_24 = arith.constant 0.000000e+00 : f32
    %80 = arith.cmpf ogt, %76, %cst_24 : f32
    %cst_25 = arith.constant 0.000000e+00 : f32
    %81 = arith.cmpf ogt, %79, %cst_25 : f32
    %82 = arith.ori %80, %81 : i1
    %83 = arith.addf %40, %76 : f32
    %84 = arith.addf %83, %79 : f32
    %85 = arith.extui %82 : i1 to i32
    %86 = arith.sitofp %85 : i32 to f32
    %87 = arith.addf %43, %86 : f32
    %c2_i32 = arith.constant 2 : i32
    %88 = arith.index_cast %c2_i32 : i32 to index
    %89 = memref.load %arg0[%88] : memref<8xi32, #tpu.memory_space<smem>>
    %90 = arith.index_cast %c2_i32 : i32 to index
    %91 = memref.load %arg1[%90] : memref<8xi32, #tpu.memory_space<smem>>
    %92 = arith.index_cast %c2_i32 : i32 to index
    %93 = memref.load %arg2[%92] : memref<8xi32, #tpu.memory_space<smem>>
    %94 = arith.index_cast %89 : i32 to index
    %c0_26 = arith.constant 0 : index
    %95 = vector.load %arg4[%94, %c0_26] : memref<8x32xf32, #tpu.memory_space<vmem>>, vector<1x32xf32>
    %96 = arith.index_cast %91 : i32 to index
    %c0_27 = arith.constant 0 : index
    %97 = vector.load %arg4[%96, %c0_27] : memref<8x32xf32, #tpu.memory_space<vmem>>, vector<1x32xf32>
    %98 = arith.index_cast %93 : i32 to index
    %c0_28 = arith.constant 0 : index
    %99 = vector.load %arg4[%98, %c0_28] : memref<8x32xf32, #tpu.memory_space<vmem>>, vector<1x32xf32>
    %100 = arith.subf %95, %97 : vector<1x32xf32>
    %101 = arith.mulf %100, %100 : vector<1x32xf32>
    %102 = vector.shape_cast %101 : vector<1x32xf32> to vector<1x1x32xf32>
    %cst_29 = arith.constant dense<0.000000e+00> : vector<1xf32>
    %103 = vector.multi_reduction <add>, %102, %cst_29 [1, 2] : vector<1x1x32xf32> to vector<1xf32>
    %104 = vector.shape_cast %103 : vector<1xf32> to vector<1x1x1xf32>
    %105 = vector.extract %104[0, 0, 0] : f32 from vector<1x1x1xf32>
    %cst_30 = arith.constant 9.99999993E-9 : f32
    %106 = arith.addf %105, %cst_30 : f32
    %107 = math.sqrt %106 : f32
    %108 = arith.subf %95, %99 : vector<1x32xf32>
    %109 = arith.mulf %108, %108 : vector<1x32xf32>
    %110 = vector.shape_cast %109 : vector<1x32xf32> to vector<1x1x32xf32>
    %cst_31 = arith.constant dense<0.000000e+00> : vector<1xf32>
    %111 = vector.multi_reduction <add>, %110, %cst_31 [1, 2] : vector<1x1x32xf32> to vector<1xf32>
    %112 = vector.shape_cast %111 : vector<1xf32> to vector<1x1x1xf32>
    %113 = vector.extract %112[0, 0, 0] : f32 from vector<1x1x1xf32>
    %cst_32 = arith.constant 9.99999993E-9 : f32
    %114 = arith.addf %113, %cst_32 : f32
    %115 = math.sqrt %114 : f32
    %116 = arith.index_cast %c2_i32 : i32 to index
    %117 = memref.load %arg3[%116] : memref<8xf32, #tpu.memory_space<smem>>
    %118 = arith.subf %107, %117 : f32
    %cst_33 = arith.constant 2.000000e-01 : f32
    %119 = arith.addf %118, %cst_33 : f32
    %cst_34 = arith.constant 0.000000e+00 : f32
    %120 = arith.maximumf %119, %cst_34 : f32
    %121 = arith.subf %117, %115 : f32
    %cst_35 = arith.constant 2.000000e-01 : f32
    %122 = arith.addf %121, %cst_35 : f32
    %cst_36 = arith.constant 0.000000e+00 : f32
    %123 = arith.maximumf %122, %cst_36 : f32
    %cst_37 = arith.constant 0.000000e+00 : f32
    %124 = arith.cmpf ogt, %120, %cst_37 : f32
    %cst_38 = arith.constant 0.000000e+00 : f32
    %125 = arith.cmpf ogt, %123, %cst_38 : f32
    %126 = arith.ori %124, %125 : i1
    %127 = arith.addf %84, %120 : f32
    %128 = arith.addf %127, %123 : f32
    %129 = arith.extui %126 : i1 to i32
    %130 = arith.sitofp %129 : i32 to f32
    %131 = arith.addf %87, %130 : f32
    %c3_i32 = arith.constant 3 : i32
    %132 = arith.index_cast %c3_i32 : i32 to index
    %133 = memref.load %arg0[%132] : memref<8xi32, #tpu.memory_space<smem>>
    %134 = arith.index_cast %c3_i32 : i32 to index
    %135 = memref.load %arg1[%134] : memref<8xi32, #tpu.memory_space<smem>>
    %136 = arith.index_cast %c3_i32 : i32 to index
    %137 = memref.load %arg2[%136] : memref<8xi32, #tpu.memory_space<smem>>
    %138 = arith.index_cast %133 : i32 to index
    %c0_39 = arith.constant 0 : index
    %139 = vector.load %arg4[%138, %c0_39] : memref<8x32xf32, #tpu.memory_space<vmem>>, vector<1x32xf32>
    %140 = arith.index_cast %135 : i32 to index
    %c0_40 = arith.constant 0 : index
    %141 = vector.load %arg4[%140, %c0_40] : memref<8x32xf32, #tpu.memory_space<vmem>>, vector<1x32xf32>
    %142 = arith.index_cast %137 : i32 to index
    %c0_41 = arith.constant 0 : index
    %143 = vector.load %arg4[%142, %c0_41] : memref<8x32xf32, #tpu.memory_space<vmem>>, vector<1x32xf32>
    %144 = arith.subf %139, %141 : vector<1x32xf32>
    %145 = arith.mulf %144, %144 : vector<1x32xf32>
    %146 = vector.shape_cast %145 : vector<1x32xf32> to vector<1x1x32xf32>
    %cst_42 = arith.constant dense<0.000000e+00> : vector<1xf32>
    %147 = vector.multi_reduction <add>, %146, %cst_42 [1, 2] : vector<1x1x32xf32> to vector<1xf32>
    %148 = vector.shape_cast %147 : vector<1xf32> to vector<1x1x1xf32>
    %149 = vector.extract %148[0, 0, 0] : f32 from vector<1x1x1xf32>
    %cst_43 = arith.constant 9.99999993E-9 : f32
    %150 = arith.addf %149, %cst_43 : f32
    %151 = math.sqrt %150 : f32
    %152 = arith.subf %139, %143 : vector<1x32xf32>
    %153 = arith.mulf %152, %152 : vector<1x32xf32>
    %154 = vector.shape_cast %153 : vector<1x32xf32> to vector<1x1x32xf32>
    %cst_44 = arith.constant dense<0.000000e+00> : vector<1xf32>
    %155 = vector.multi_reduction <add>, %154, %cst_44 [1, 2] : vector<1x1x32xf32> to vector<1xf32>
    %156 = vector.shape_cast %155 : vector<1xf32> to vector<1x1x1xf32>
    %157 = vector.extract %156[0, 0, 0] : f32 from vector<1x1x1xf32>
    %cst_45 = arith.constant 9.99999993E-9 : f32
    %158 = arith.addf %157, %cst_45 : f32
    %159 = math.sqrt %158 : f32
    %160 = arith.index_cast %c3_i32 : i32 to index
    %161 = memref.load %arg3[%160] : memref<8xf32, #tpu.memory_space<smem>>
    %162 = arith.subf %151, %161 : f32
    %cst_46 = arith.constant 2.000000e-01 : f32
    %163 = arith.addf %162, %cst_46 : f32
    %cst_47 = arith.constant 0.000000e+00 : f32
    %164 = arith.maximumf %163, %cst_47 : f32
    %165 = arith.subf %161, %159 : f32
    %cst_48 = arith.constant 2.000000e-01 : f32
    %166 = arith.addf %165, %cst_48 : f32
    %cst_49 = arith.constant 0.000000e+00 : f32
    %167 = arith.maximumf %166, %cst_49 : f32
    %cst_50 = arith.constant 0.000000e+00 : f32
    %168 = arith.cmpf ogt, %164, %cst_50 : f32
    %cst_51 = arith.constant 0.000000e+00 : f32
    %169 = arith.cmpf ogt, %167, %cst_51 : f32
    %170 = arith.ori %168, %169 : i1
    %171 = arith.addf %128, %164 : f32
    %172 = arith.addf %171, %167 : f32
    %173 = arith.extui %170 : i1 to i32
    %174 = arith.sitofp %173 : i32 to f32
    %175 = arith.addf %131, %174 : f32
    %c4_i32 = arith.constant 4 : i32
    %176 = arith.index_cast %c4_i32 : i32 to index
    %177 = memref.load %arg0[%176] : memref<8xi32, #tpu.memory_space<smem>>
    %178 = arith.index_cast %c4_i32 : i32 to index
    %179 = memref.load %arg1[%178] : memref<8xi32, #tpu.memory_space<smem>>
    %180 = arith.index_cast %c4_i32 : i32 to index
    %181 = memref.load %arg2[%180] : memref<8xi32, #tpu.memory_space<smem>>
    %182 = arith.index_cast %177 : i32 to index
    %c0_52 = arith.constant 0 : index
    %183 = vector.load %arg4[%182, %c0_52] : memref<8x32xf32, #tpu.memory_space<vmem>>, vector<1x32xf32>
    %184 = arith.index_cast %179 : i32 to index
    %c0_53 = arith.constant 0 : index
    %185 = vector.load %arg4[%184, %c0_53] : memref<8x32xf32, #tpu.memory_space<vmem>>, vector<1x32xf32>
    %186 = arith.index_cast %181 : i32 to index
    %c0_54 = arith.constant 0 : index
    %187 = vector.load %arg4[%186, %c0_54] : memref<8x32xf32, #tpu.memory_space<vmem>>, vector<1x32xf32>
    %188 = arith.subf %183, %185 : vector<1x32xf32>
    %189 = arith.mulf %188, %188 : vector<1x32xf32>
    %190 = vector.shape_cast %189 : vector<1x32xf32> to vector<1x1x32xf32>
    %cst_55 = arith.constant dense<0.000000e+00> : vector<1xf32>
    %191 = vector.multi_reduction <add>, %190, %cst_55 [1, 2] : vector<1x1x32xf32> to vector<1xf32>
    %192 = vector.shape_cast %191 : vector<1xf32> to vector<1x1x1xf32>
    %193 = vector.extract %192[0, 0, 0] : f32 from vector<1x1x1xf32>
    %cst_56 = arith.constant 9.99999993E-9 : f32
    %194 = arith.addf %193, %cst_56 : f32
    %195 = math.sqrt %194 : f32
    %196 = arith.subf %183, %187 : vector<1x32xf32>
    %197 = arith.mulf %196, %196 : vector<1x32xf32>
    %198 = vector.shape_cast %197 : vector<1x32xf32> to vector<1x1x32xf32>
    %cst_57 = arith.constant dense<0.000000e+00> : vector<1xf32>
    %199 = vector.multi_reduction <add>, %198, %cst_57 [1, 2] : vector<1x1x32xf32> to vector<1xf32>
    %200 = vector.shape_cast %199 : vector<1xf32> to vector<1x1x1xf32>
    %201 = vector.extract %200[0, 0, 0] : f32 from vector<1x1x1xf32>
    %cst_58 = arith.constant 9.99999993E-9 : f32
    %202 = arith.addf %201, %cst_58 : f32
    %203 = math.sqrt %202 : f32
    %204 = arith.index_cast %c4_i32 : i32 to index
    %205 = memref.load %arg3[%204] : memref<8xf32, #tpu.memory_space<smem>>
    %206 = arith.subf %195, %205 : f32
    %cst_59 = arith.constant 2.000000e-01 : f32
    %207 = arith.addf %206, %cst_59 : f32
    %cst_60 = arith.constant 0.000000e+00 : f32
    %208 = arith.maximumf %207, %cst_60 : f32
    %209 = arith.subf %205, %203 : f32
    %cst_61 = arith.constant 2.000000e-01 : f32
    %210 = arith.addf %209, %cst_61 : f32
    %cst_62 = arith.constant 0.000000e+00 : f32
    %211 = arith.maximumf %210, %cst_62 : f32
    %cst_63 = arith.constant 0.000000e+00 : f32
    %212 = arith.cmpf ogt, %208, %cst_63 : f32
    %cst_64 = arith.constant 0.000000e+00 : f32
    %213 = arith.cmpf ogt, %211, %cst_64 : f32
    %214 = arith.ori %212, %213 : i1
    %215 = arith.addf %172, %208 : f32
    %216 = arith.addf %215, %211 : f32
    %217 = arith.extui %214 : i1 to i32
    %218 = arith.sitofp %217 : i32 to f32
    %219 = arith.addf %175, %218 : f32
    %c5_i32 = arith.constant 5 : i32
    %220 = arith.index_cast %c5_i32 : i32 to index
    %221 = memref.load %arg0[%220] : memref<8xi32, #tpu.memory_space<smem>>
    %222 = arith.index_cast %c5_i32 : i32 to index
    %223 = memref.load %arg1[%222] : memref<8xi32, #tpu.memory_space<smem>>
    %224 = arith.index_cast %c5_i32 : i32 to index
    %225 = memref.load %arg2[%224] : memref<8xi32, #tpu.memory_space<smem>>
    %226 = arith.index_cast %221 : i32 to index
    %c0_65 = arith.constant 0 : index
    %227 = vector.load %arg4[%226, %c0_65] : memref<8x32xf32, #tpu.memory_space<vmem>>, vector<1x32xf32>
    %228 = arith.index_cast %223 : i32 to index
    %c0_66 = arith.constant 0 : index
    %229 = vector.load %arg4[%228, %c0_66] : memref<8x32xf32, #tpu.memory_space<vmem>>, vector<1x32xf32>
    %230 = arith.index_cast %225 : i32 to index
    %c0_67 = arith.constant 0 : index
    %231 = vector.load %arg4[%230, %c0_67] : memref<8x32xf32, #tpu.memory_space<vmem>>, vector<1x32xf32>
    %232 = arith.subf %227, %229 : vector<1x32xf32>
    %233 = arith.mulf %232, %232 : vector<1x32xf32>
    %234 = vector.shape_cast %233 : vector<1x32xf32> to vector<1x1x32xf32>
    %cst_68 = arith.constant dense<0.000000e+00> : vector<1xf32>
    %235 = vector.multi_reduction <add>, %234, %cst_68 [1, 2] : vector<1x1x32xf32> to vector<1xf32>
    %236 = vector.shape_cast %235 : vector<1xf32> to vector<1x1x1xf32>
    %237 = vector.extract %236[0, 0, 0] : f32 from vector<1x1x1xf32>
    %cst_69 = arith.constant 9.99999993E-9 : f32
    %238 = arith.addf %237, %cst_69 : f32
    %239 = math.sqrt %238 : f32
    %240 = arith.subf %227, %231 : vector<1x32xf32>
    %241 = arith.mulf %240, %240 : vector<1x32xf32>
    %242 = vector.shape_cast %241 : vector<1x32xf32> to vector<1x1x32xf32>
    %cst_70 = arith.constant dense<0.000000e+00> : vector<1xf32>
    %243 = vector.multi_reduction <add>, %242, %cst_70 [1, 2] : vector<1x1x32xf32> to vector<1xf32>
    %244 = vector.shape_cast %243 : vector<1xf32> to vector<1x1x1xf32>
    %245 = vector.extract %244[0, 0, 0] : f32 from vector<1x1x1xf32>
    %cst_71 = arith.constant 9.99999993E-9 : f32
    %246 = arith.addf %245, %cst_71 : f32
    %247 = math.sqrt %246 : f32
    %248 = arith.index_cast %c5_i32 : i32 to index
    %249 = memref.load %arg3[%248] : memref<8xf32, #tpu.memory_space<smem>>
    %250 = arith.subf %239, %249 : f32
    %cst_72 = arith.constant 2.000000e-01 : f32
    %251 = arith.addf %250, %cst_72 : f32
    %cst_73 = arith.constant 0.000000e+00 : f32
    %252 = arith.maximumf %251, %cst_73 : f32
    %253 = arith.subf %249, %247 : f32
    %cst_74 = arith.constant 2.000000e-01 : f32
    %254 = arith.addf %253, %cst_74 : f32
    %cst_75 = arith.constant 0.000000e+00 : f32
    %255 = arith.maximumf %254, %cst_75 : f32
    %cst_76 = arith.constant 0.000000e+00 : f32
    %256 = arith.cmpf ogt, %252, %cst_76 : f32
    %cst_77 = arith.constant 0.000000e+00 : f32
    %257 = arith.cmpf ogt, %255, %cst_77 : f32
    %258 = arith.ori %256, %257 : i1
    %259 = arith.addf %216, %252 : f32
    %260 = arith.addf %259, %255 : f32
    %261 = arith.extui %258 : i1 to i32
    %262 = arith.sitofp %261 : i32 to f32
    %263 = arith.addf %219, %262 : f32
    %c6_i32 = arith.constant 6 : i32
    %264 = arith.index_cast %c6_i32 : i32 to index
    %265 = memref.load %arg0[%264] : memref<8xi32, #tpu.memory_space<smem>>
    %266 = arith.index_cast %c6_i32 : i32 to index
    %267 = memref.load %arg1[%266] : memref<8xi32, #tpu.memory_space<smem>>
    %268 = arith.index_cast %c6_i32 : i32 to index
    %269 = memref.load %arg2[%268] : memref<8xi32, #tpu.memory_space<smem>>
    %270 = arith.index_cast %265 : i32 to index
    %c0_78 = arith.constant 0 : index
    %271 = vector.load %arg4[%270, %c0_78] : memref<8x32xf32, #tpu.memory_space<vmem>>, vector<1x32xf32>
    %272 = arith.index_cast %267 : i32 to index
    %c0_79 = arith.constant 0 : index
    %273 = vector.load %arg4[%272, %c0_79] : memref<8x32xf32, #tpu.memory_space<vmem>>, vector<1x32xf32>
    %274 = arith.index_cast %269 : i32 to index
    %c0_80 = arith.constant 0 : index
    %275 = vector.load %arg4[%274, %c0_80] : memref<8x32xf32, #tpu.memory_space<vmem>>, vector<1x32xf32>
    %276 = arith.subf %271, %273 : vector<1x32xf32>
    %277 = arith.mulf %276, %276 : vector<1x32xf32>
    %278 = vector.shape_cast %277 : vector<1x32xf32> to vector<1x1x32xf32>
    %cst_81 = arith.constant dense<0.000000e+00> : vector<1xf32>
    %279 = vector.multi_reduction <add>, %278, %cst_81 [1, 2] : vector<1x1x32xf32> to vector<1xf32>
    %280 = vector.shape_cast %279 : vector<1xf32> to vector<1x1x1xf32>
    %281 = vector.extract %280[0, 0, 0] : f32 from vector<1x1x1xf32>
    %cst_82 = arith.constant 9.99999993E-9 : f32
    %282 = arith.addf %281, %cst_82 : f32
    %283 = math.sqrt %282 : f32
    %284 = arith.subf %271, %275 : vector<1x32xf32>
    %285 = arith.mulf %284, %284 : vector<1x32xf32>
    %286 = vector.shape_cast %285 : vector<1x32xf32> to vector<1x1x32xf32>
    %cst_83 = arith.constant dense<0.000000e+00> : vector<1xf32>
    %287 = vector.multi_reduction <add>, %286, %cst_83 [1, 2] : vector<1x1x32xf32> to vector<1xf32>
    %288 = vector.shape_cast %287 : vector<1xf32> to vector<1x1x1xf32>
    %289 = vector.extract %288[0, 0, 0] : f32 from vector<1x1x1xf32>
    %cst_84 = arith.constant 9.99999993E-9 : f32
    %290 = arith.addf %289, %cst_84 : f32
    %291 = math.sqrt %290 : f32
    %292 = arith.index_cast %c6_i32 : i32 to index
    %293 = memref.load %arg3[%292] : memref<8xf32, #tpu.memory_space<smem>>
    %294 = arith.subf %283, %293 : f32
    %cst_85 = arith.constant 2.000000e-01 : f32
    %295 = arith.addf %294, %cst_85 : f32
    %cst_86 = arith.constant 0.000000e+00 : f32
    %296 = arith.maximumf %295, %cst_86 : f32
    %297 = arith.subf %293, %291 : f32
    %cst_87 = arith.constant 2.000000e-01 : f32
    %298 = arith.addf %297, %cst_87 : f32
    %cst_88 = arith.constant 0.000000e+00 : f32
    %299 = arith.maximumf %298, %cst_88 : f32
    %cst_89 = arith.constant 0.000000e+00 : f32
    %300 = arith.cmpf ogt, %296, %cst_89 : f32
    %cst_90 = arith.constant 0.000000e+00 : f32
    %301 = arith.cmpf ogt, %299, %cst_90 : f32
    %302 = arith.ori %300, %301 : i1
    %303 = arith.addf %260, %296 : f32
    %304 = arith.addf %303, %299 : f32
    %305 = arith.extui %302 : i1 to i32
    %306 = arith.sitofp %305 : i32 to f32
    %307 = arith.addf %263, %306 : f32
    %c7_i32 = arith.constant 7 : i32
    %308 = arith.index_cast %c7_i32 : i32 to index
    %309 = memref.load %arg0[%308] : memref<8xi32, #tpu.memory_space<smem>>
    %310 = arith.index_cast %c7_i32 : i32 to index
    %311 = memref.load %arg1[%310] : memref<8xi32, #tpu.memory_space<smem>>
    %312 = arith.index_cast %c7_i32 : i32 to index
    %313 = memref.load %arg2[%312] : memref<8xi32, #tpu.memory_space<smem>>
    %314 = arith.index_cast %309 : i32 to index
    %c0_91 = arith.constant 0 : index
    %315 = vector.load %arg4[%314, %c0_91] : memref<8x32xf32, #tpu.memory_space<vmem>>, vector<1x32xf32>
    %316 = arith.index_cast %311 : i32 to index
    %c0_92 = arith.constant 0 : index
    %317 = vector.load %arg4[%316, %c0_92] : memref<8x32xf32, #tpu.memory_space<vmem>>, vector<1x32xf32>
    %318 = arith.index_cast %313 : i32 to index
    %c0_93 = arith.constant 0 : index
    %319 = vector.load %arg4[%318, %c0_93] : memref<8x32xf32, #tpu.memory_space<vmem>>, vector<1x32xf32>
    %320 = arith.subf %315, %317 : vector<1x32xf32>
    %321 = arith.mulf %320, %320 : vector<1x32xf32>
    %322 = vector.shape_cast %321 : vector<1x32xf32> to vector<1x1x32xf32>
    %cst_94 = arith.constant dense<0.000000e+00> : vector<1xf32>
    %323 = vector.multi_reduction <add>, %322, %cst_94 [1, 2] : vector<1x1x32xf32> to vector<1xf32>
    %324 = vector.shape_cast %323 : vector<1xf32> to vector<1x1x1xf32>
    %325 = vector.extract %324[0, 0, 0] : f32 from vector<1x1x1xf32>
    %cst_95 = arith.constant 9.99999993E-9 : f32
    %326 = arith.addf %325, %cst_95 : f32
    %327 = math.sqrt %326 : f32
    %328 = arith.subf %315, %319 : vector<1x32xf32>
    %329 = arith.mulf %328, %328 : vector<1x32xf32>
    %330 = vector.shape_cast %329 : vector<1x32xf32> to vector<1x1x32xf32>
    %cst_96 = arith.constant dense<0.000000e+00> : vector<1xf32>
    %331 = vector.multi_reduction <add>, %330, %cst_96 [1, 2] : vector<1x1x32xf32> to vector<1xf32>
    %332 = vector.shape_cast %331 : vector<1xf32> to vector<1x1x1xf32>
    %333 = vector.extract %332[0, 0, 0] : f32 from vector<1x1x1xf32>
    %cst_97 = arith.constant 9.99999993E-9 : f32
    %334 = arith.addf %333, %cst_97 : f32
    %335 = math.sqrt %334 : f32
    %336 = arith.index_cast %c7_i32 : i32 to index
    %337 = memref.load %arg3[%336] : memref<8xf32, #tpu.memory_space<smem>>
    %338 = arith.subf %327, %337 : f32
    %cst_98 = arith.constant 2.000000e-01 : f32
    %339 = arith.addf %338, %cst_98 : f32
    %cst_99 = arith.constant 0.000000e+00 : f32
    %340 = arith.maximumf %339, %cst_99 : f32
    %341 = arith.subf %337, %335 : f32
    %cst_100 = arith.constant 2.000000e-01 : f32
    %342 = arith.addf %341, %cst_100 : f32
    %cst_101 = arith.constant 0.000000e+00 : f32
    %343 = arith.maximumf %342, %cst_101 : f32
    %cst_102 = arith.constant 0.000000e+00 : f32
    %344 = arith.cmpf ogt, %340, %cst_102 : f32
    %cst_103 = arith.constant 0.000000e+00 : f32
    %345 = arith.cmpf ogt, %343, %cst_103 : f32
    %346 = arith.ori %344, %345 : i1
    %347 = arith.addf %304, %340 : f32
    %348 = arith.addf %347, %343 : f32
    %349 = arith.extui %346 : i1 to i32
    %350 = arith.sitofp %349 : i32 to f32
    %351 = arith.addf %307, %350 : f32
    %c8_i32 = arith.constant 8 : i32
    %cst_104 = arith.constant 1.000000e+00 : f32
    %352 = arith.maximumf %351, %cst_104 : f32
    %353 = arith.divf %348, %352 : f32
    %c0_105 = arith.constant 0 : index
    %c0_106 = arith.constant 0 : index
    %354 = memref.load %arg5[%c0_105, %c0_106] : memref<1x1xf32, #tpu.memory_space<smem>>
    memref.store %353, %arg5[%c0_105, %c0_106] : memref<1x1xf32, #tpu.memory_space<smem>>
    return
  }
}

</mosaic_0001>

<bundles_post_ra>
// kernel: _forward_impl.1
= control target key start
LH: loop header
LB: loop body
LE: loop exit
PB: predicated region body
PF: predicated region fallthrough
CT: control target
= control target key end

     0   :  { %10 = vsyncpa [#allocation4], 0  ;;  %s1182_s0 = inlined_call_operand.vmem [shape: s32[8], index: 0, kind: input, shape index: {}]   ;;  %s1183_s1 = inlined_call_operand.vmem [shape: s32[8], index: 1, kind: input, shape index: {}]   ;;  %s1184_s2 = inlined_call_operand.vmem [shape: s32[8], index: 2, kind: input, shape index: {}]   ;;  %s1185_s3 = inlined_call_operand.vmem [shape: f32[8], index: 3, kind: input, shape index: {}]   ;;  %s1186_s4 = inlined_call_operand.vmem [shape: f32[8,32], index: 4, kind: input, shape index: {}]   ;;  %s1187_s5 = inlined_call_operand.hbm [shape: f32[1,1], index: 5, kind: output, shape index: {}]  }
   0x1   :  { %11 = vsyncpa [#allocation6], 0 }
   0x2   :  { %12 = vsyncpa [#allocation9], 0  ;;  %s30_s20 = sshll.u32 %s1183_s1, 4  ;;  %s31_s20 = int_to_ptr.vmem [resolvable:$true] %s30_s20 }
   0x3   :  { %13 = vsyncpa [#allocation3], 0  ;;  %s20_s23 = sshll.u32 %s1182_s0, 4  ;;  %s796_s24 = scalar_lea.vmem %s31_s20, 16  ;;  %s21_s23 = int_to_ptr.vmem [resolvable:$true] %s20_s23 }
   0x4   :  { %p797_p0 = scmp.ne.s32.totalorder %s31_s20, %s796_s24  ;;  %p801_p1 = scmp.lt.s32.totalorder %s31_s20, %s31_s20 }
   0x5   :  { %p802_p2 = scmp.lt.s32.totalorder %s796_s24, %s796_s24 }
   0x7   :  { %p803_p3 = por %p802_p2, %p801_p1 }
   0x9   :  { %p804_p4 = pnand %p803_p3, %p797_p0 }
   0xb   :  { %807 = shalt.err (!%p804_p4)
}
   0xc   :  { %s862_s25 = smov [#allocation5]   ;;  %s808_s26 = scalar_lea.vmem %s21_s23, 16 }
   0xd   :  { %33 = dma.vmem_to_smem %s31_s20, 16, %s862_s25, [#allocation6]  }
   0xe   :  { %p809_p5 = scmp.ne.s32.totalorder %s21_s23, %s808_s26  ;;  %p813_p6 = scmp.lt.s32.totalorder %s21_s23, %s21_s23 }
   0xf   :  { %p814_p7 = scmp.lt.s32.totalorder %s808_s26, %s808_s26 }
  0x11   :  { %p815_p8 = por %p814_p7, %p813_p6 }
  0x13   :  { %p816_p9 = pnand %p815_p8, %p809_p5 }
  0x15   :  { %819 = shalt.err (!%p816_p9)
}
  0x16   :  { %s863_s1 = smov [#allocation2]   ;;  %s40_s28 = sshll.u32 %s1184_s2, 4  ;;  %s41_s28 = int_to_ptr.vmem [resolvable:$true] %s40_s28 }
  0x17   :  { %23 = dma.vmem_to_smem %s21_s23, 16, %s863_s1, [#allocation4]  }
  0x18   :  { %s50_s6 = sshll.u32 %s1185_s3, 4  ;;  %s820_s7 = scalar_lea.vmem %s41_s28, 16  ;;  %s51_s6 = int_to_ptr.vmem [resolvable:$true] %s50_s6 }
  0x19   :  { %p821_p10 = scmp.ne.s32.totalorder %s41_s28, %s820_s7  ;;  %p825_p11 = scmp.lt.s32.totalorder %s41_s28, %s41_s28 }
  0x1a   :  { %p826_p12 = scmp.lt.s32.totalorder %s820_s7, %s820_s7 }
  0x1c   :  { %p827_p13 = por %p826_p12, %p825_p11 }
  0x1e   :  { %p828_p0 = pnand %p827_p13, %p821_p10 }
  0x20   :  { %831 = shalt.err (!%p828_p0)
}
  0x21   :  { %s864_s8 = smov [#allocation7]   ;;  %s832_s9 = scalar_lea.vmem %s51_s6, 16 }
  0x22   :  { %43 = dma.vmem_to_smem %s41_s28, 16, %s864_s8, [#allocation6]  }
  0x23   :  { %p833_p1 = scmp.ne.s32.totalorder %s51_s6, %s832_s9  ;;  %p837_p2 = scmp.lt.s32.totalorder %s51_s6, %s51_s6 }
  0x24   :  { %p838_p3 = scmp.lt.s32.totalorder %s832_s9, %s832_s9 }
  0x26   :  { %p839_p4 = por %p838_p3, %p837_p2 }
  0x28   :  { %p840_p5 = pnand %p839_p4, %p833_p1 }
  0x2a   :  { %843 = shalt.err (!%p840_p5)
}
  0x2b   :  { %s865_s2 = smov [#allocation8]  }
  0x2c   :  { %53 = dma.vmem_to_smem %s51_s6, 16, %s865_s2, [#allocation9]  }
  0x2d   :  { %854 = dma.done.wait [#allocation4], 16  }
  0x2e   :  { %855 = vsyncadd [#allocation4], 4294967280 }
  0x2f   :  { %856 = dma.done.wait [#allocation6], 32  }
  0x30   :  { %857 = vsyncadd [#allocation6], 4294967264 }
  0x31   :  { %858 = dma.done.wait [#allocation9], 16  }
  0x32   :  { %859 = vsyncadd [#allocation9], 4294967280 }
  0x33   :  { %68 = sfence }
  0x34   :  { %s69_s3 = sld [smem:[#allocation2]]  ;;  %s661_s12 = sld [smem:[#allocation2 + $0x1]]  ;;  %vm80_vm0 = vcmask 253952  }
  0x35   :  { %s70_s10 = sld [smem:[#allocation5]]  ;;  %s662_s13 = sld [smem:[#allocation5 + $0x1]] }
  0x36   :  { %s71_s11 = sld [smem:[#allocation7]]  ;;  %s663_s27 = sld [smem:[#allocation7 + $0x1]] }
  0x37   :  { %s665_s6 = sld [smem:[#allocation2 + $0x2]]  ;;  %s669_s18 = sld [smem:[#allocation2 + $0x3]] }
  0x38   :  { %s666_s7 = sld [smem:[#allocation5 + $0x2]] }
  0x3a   :  { %s72_s16 = scalar_lea.vmem %s1186_s4, %s69_s3  ;;  %s141_s25 = scalar_lea.vmem %s1186_s4, %s661_s12 }
  0x3b   :  { %s74_s19 = scalar_lea.vmem %s1186_s4, %s70_s10  ;;  %v73_v0 = vld [vmem:[%s72_s16] sm:$0x1]  ;;  %s143_s0 = scalar_lea.vmem %s1186_s4, %s662_s13 }
  0x3c   :  { %v75_v1 = vld [vmem:[%s74_s19] sm:$0x1]  ;;  %s76_s22 = scalar_lea.vmem %s1186_s4, %s71_s11  ;;  %s145_s30 = scalar_lea.vmem %s1186_s4, %s663_s27 }
  0x3d   :  { %v78_v2 = vsub.f32 %v73_v0, %v75_v1  ;;  %v77_v3 = vld [vmem:[%s76_s22] sm:$0x1]  ;;  %s209_s2 = scalar_lea.vmem %s1186_s4, %s665_s6  ;;  %s667_s12 = sld [smem:[#allocation7 + $0x2]] }
  0x3e   :  { %v142_v4 = vld [vmem:[%s141_s25] sm:$0x1]  ;;  %v101_v5 = vsub.f32 %v73_v0, %v77_v3  ;;  %s211_s11 = scalar_lea.vmem %s1186_s4, %s666_s7  ;;  %s670_s19 = sld [smem:[#allocation5 + $0x3]] }
  0x3f   :  { %v144_v6 = vld [vmem:[%s143_s0] sm:$0x1]  ;;  %v79_v7 = vmul.f32 %v78_v2, %v78_v2  ;;  %s277_s22 = scalar_lea.vmem %s1186_s4, %s669_s18  ;;  %s671_s27 = sld [smem:[#allocation7 + $0x3]] }
  0x40   :  { %v147_v8 = vsub.f32 %v142_v4, %v144_v6  ;;  %v102_v9 = vmul.f32 %v101_v5, %v101_v5  ;;  %v146_v14 = vld [vmem:[%s145_s30] sm:$0x1]  ;;  %s123_s6 = sld [smem:[#allocation8]]  ;;  %s866_s10 = smov 0.0  }
  0x41   :  { %v81_v10 = vsel %vm80_vm0, %v79_v7, 0.0  ;;  %v169_v15 = vsub.f32 %v142_v4, %v146_v14  ;;  %v210_v18 = vld [vmem:[%s209_s2] sm:$0x1]  ;;  %s674_s18 = sld [smem:[#allocation5 + $0x4]] }
  0x42   :  { %v148_v11 = vmul.f32 %v147_v8, %v147_v8  ;;  %82 = vadd.xlane.f32.xlu0 %v81_v10  ;;  %v103_v12 = vsel %vm80_vm0, %v102_v9, 0.0  ;;  %v212_v19 = vld [vmem:[%s211_s11] sm:$0x1] }
  0x43   :  { %v170_v16 = vmul.f32 %v169_v15, %v169_v15  ;;  %v215_v20 = vsub.f32 %v210_v18, %v212_v19  ;;  %s213_s15 = scalar_lea.vmem %s1186_s4, %s667_s12  ;;  %v278_v47 = vld [vmem:[%s277_s22] sm:$0x1]  ;;  %s678_s22 = sld [smem:[#allocation5 + $0x5]] }
  0x44   :  { %v149_v13 = vsel %vm80_vm0, %v148_v11, 0.0  ;;  %v214_v30 = vld [vmem:[%s213_s15] sm:$0x1]  ;;  %s279_s25 = scalar_lea.vmem %s1186_s4, %s670_s19 }
  0x45   :  { %150 = vadd.xlane.f32.xlu1 %v149_v13  ;;  %v171_v17 = vsel %vm80_vm0, %v170_v16, 0.0  ;;  %v216_v21 = vmul.f32 %v215_v20, %v215_v20  ;;  %v237_v31 = vsub.f32 %v210_v18, %v214_v30  ;;  %v280_v48 = vld [vmem:[%s279_s25] sm:$0x1]  ;;  %s281_s30 = scalar_lea.vmem %s1186_s4, %s671_s27  ;;  %s979_s25 = sld [smem:[#allocation8 + $0x1]] }
  0x46   :  { %104 = vadd.xlane.f32.xlu0 %v103_v12  ;;  %v283_v49 = vsub.f32 %v278_v47, %v280_v48  ;;  %v282_v1 = vld [vmem:[%s281_s30] sm:$0x1] }
  0x47   :  { %v217_v22 = vsel %vm80_vm0, %v216_v21, 0.0  ;;  %v238_v32 = vmul.f32 %v237_v31, %v237_v31  ;;  %v305_v2 = vsub.f32 %v278_v47, %v282_v1  ;;  %s347_s24 = scalar_lea.vmem %s1186_s4, %s674_s18 }
  0x48   :  { %v284_v50 = vmul.f32 %v283_v49, %v283_v49  ;;  %v348_v19 = vld [vmem:[%s347_s24] sm:$0x1] }
  0x49   :  { %172 = vadd.xlane.f32.xlu1 %v171_v17  ;;  %v239_v33 = vsel %vm80_vm0, %v238_v32, 0.0  ;;  %v306_v3 = vmul.f32 %v305_v2, %v305_v2 }
  0x4a   :  { %218 = vadd.xlane.f32.xlu0 %v217_v22  ;;  %v285_v51 = vsel %vm80_vm0, %v284_v50, 0.0 }
  0x4b   :  { %v307_v4 = vsel %vm80_vm0, %v306_v3, 0.0 }
  0x4d   :  { %240 = vadd.xlane.f32.xlu1 %v239_v33 }
  0x4e   :  { %286 = vadd.xlane.f32.xlu0 %v285_v51 }
  0x51   :  { %308 = vadd.xlane.f32.xlu1 %v307_v4 }
  0xcf   :  { %v83_v23 = vpop.xlane.xlu0 %82 }
  0xd0   :  { %v84_v24 = vrot.slane %v83_v23, 4 }
  0xd2   :  { %v85_v25 = vadd.f32 %v84_v24, %v83_v23  ;;  %v151_v52 = vpop.xlane.xlu1 %150 }
  0xd3   :  { %v105_v34 = vpop.xlane.xlu0 %104  ;;  %v152_v53 = vrot.slane %v151_v52, 4 }
  0xd4   :  { %v86_v26 = vrot.slane %v85_v25, 2  ;;  %v106_v35 = vrot.slane %v105_v34, 4 }
  0xd5   :  { %v153_v54 = vadd.f32 %v152_v53, %v151_v52 }
  0xd6   :  { %v87_v27 = vadd.f32 %v86_v26, %v85_v25  ;;  %v107_v36 = vadd.f32 %v106_v35, %v105_v34  ;;  %v173_v5 = vpop.xlane.xlu1 %172 }
  0xd7   :  { %v154_v56 = vrot.slane %v153_v54, 2  ;;  %v174_v6 = vrot.slane %v173_v5, 4  ;;  %v219_v23 = vpop.xlane.xlu0 %218 }
  0xd8   :  { %v88_v28 = vrot.slane %v87_v27, 1  ;;  %v108_v38 = vrot.slane %v107_v36, 2  ;;  %v220_v24 = vrot.slane %v219_v23, 4 }
  0xd9   :  { %v155_v57 = vadd.f32 %v154_v56, %v153_v54  ;;  %v175_v7 = vadd.f32 %v174_v6, %v173_v5 }
  0xda   :  { %v89_v29 = vadd.f32 %v88_v28, %v87_v27  ;;  %v109_v39 = vadd.f32 %v108_v38, %v107_v36  ;;  %v221_v25 = vadd.f32 %v220_v24, %v219_v23 }
  0xdb   :  { %v156_v59 = vrot.slane %v155_v57, 1  ;;  %v176_v9 = vrot.slane %v175_v7, 2 }
  0xdc   :  { %689 = vpush %v89_v29  ;;  %v110_v41 = vrot.slane %v109_v39, 1  ;;  %v222_v27 = vrot.slane %v221_v25, 2 }
  0xdd   :  { %v157_v0 = vadd.f32 %v156_v59, %v155_v57  ;;  %v177_v10 = vadd.f32 %v176_v9, %v175_v7 }
  0xde   :  { %v111_v46 = vadd.f32 %v110_v41, %v109_v39  ;;  %v223_v28 = vadd.f32 %v222_v27, %v221_v25 }
  0xdf   :  { %v178_v12 = vrot.slane %v177_v10, 1 }
  0xe0   :  { %v224_v30 = vrot.slane %v223_v28, 1 }
  0xe1   :  { %v179_v17 = vadd.f32 %v178_v12, %v177_v10 }
  0xe2   :  { %v225_v35 = vadd.f32 %v224_v30, %v223_v28 }
 0x10d   :  { %s690_s16 = spop %689 }
 0x10e   :  { %s91_s17 = sadd.f32 1e-08, %s690_s16  ;;  %s677_s16 = sld [smem:[#allocation2 + $0x5]] }
 0x110   :  { %v92_v37 = vstv %s91_s17  ;;  %s673_s17 = sld [smem:[#allocation2 + $0x4]] }
 0x111   :  { %762 = vrsqrt.f32 %v92_v37  ;;  %vm95_vm1 = vcmp.eq.f32.partialorder %v92_v37, inf  ;;  %v98_v43 = vand.u32 2147483648, %v92_v37  ;;  %vm97_vm2 = vcmp.eq.f32.partialorder %v92_v37, 0.0 }
 0x116   :  { %s345_s21 = scalar_lea.vmem %s1186_s4, %s673_s17 }
 0x117   :  { %v346_v18 = vld [vmem:[%s345_s21] sm:$0x1] }
 0x118   :  { %v351_v20 = vsub.f32 %v346_v18, %v348_v19 }
 0x11a   :  { %v352_v21 = vmul.f32 %v351_v20, %v351_v20 }
 0x11b   :  { %v763_v40 = vpop.eup %762 }
 0x11c   :  { %v94_v42 = vmul.f32 %v763_v40, %v92_v37  ;;  %v353_v22 = vsel %vm80_vm0, %v352_v21, 0.0  ;;  %v241_v40 = vpop.xlane.xlu1 %240 }
 0x11d   :  { %354 = vadd.xlane.f32.xlu0 %v353_v22  ;;  %v242_v41 = vrot.slane %v241_v40, 4 }
 0x11e   :  { %v96_v44 = vsel %vm95_vm1, %v92_v37, %v94_v42 }
 0x11f   :  { %v99_v45 = vsel %vm97_vm2, %v98_v43, %v96_v44  ;;  %v243_v42 = vadd.f32 %v242_v41, %v241_v40 }
 0x120   :  { %691 = vpush %v99_v45 }
 0x121   :  { %693 = vpush %v111_v46  ;;  %v244_v44 = vrot.slane %v243_v42, 2 }
 0x123   :  { %v245_v45 = vadd.f32 %v244_v44, %v243_v42 }
 0x125   :  { %v246_v47 = vrot.slane %v245_v45, 1 }
 0x127   :  { %v247_v52 = vadd.f32 %v246_v47, %v245_v45 }
 0x151   :  { %s951_s26 = spop %691 }
 0x152   :  { %s694_s1 = spop %693  ;;  %s124_s7 = ssub.f32 %s951_s26, %s123_s6 }
 0x153   :  { %s113_s0 = sadd.f32 1e-08, %s694_s1 }
 0x154   :  { %s125_s8 = sadd.f32 0.2, %s124_s7 }
 0x155   :  { %v114_v55 = vstv %s113_s0 }
 0x156   :  { %764 = vrsqrt.f32 %v114_v55  ;;  %vm117_vm3 = vcmp.eq.f32.partialorder %v114_v55, inf  ;;  %v120_v61 = vand.u32 2147483648, %v114_v55  ;;  %vm119_vm4 = vcmp.eq.f32.partialorder %v114_v55, 0.0  ;;  %s959_s11 = smax.f32 %s866_s10, %s125_s8 }
 0x157   :  { %p130_p6 = scmp.gt.f32.partialorder %s959_s11, 0.0 }
 0x160   :  { %v765_v58 = vpop.eup %764 }
 0x161   :  { %v116_v60 = vmul.f32 %v765_v58, %v114_v55  ;;  %v287_v58 = vpop.xlane.xlu0 %286 }
 0x162   :  { %v288_v59 = vrot.slane %v287_v58, 4 }
 0x163   :  { %v118_v62 = vsel %vm117_vm3, %v114_v55, %v116_v60 }
 0x164   :  { %v121_v63 = vsel %vm119_vm4, %v120_v61, %v118_v62  ;;  %v289_v60 = vadd.f32 %v288_v59, %v287_v58 }
 0x165   :  { %695 = vpush %v121_v63 }
 0x166   :  { %697 = vpush %v157_v0  ;;  %v290_v62 = vrot.slane %v289_v60, 2 }
 0x168   :  { %v291_v63 = vadd.f32 %v290_v62, %v289_v60 }
 0x16a   :  { %v292_v1 = vrot.slane %v291_v63, 1 }
 0x16c   :  { %v293_v6 = vadd.f32 %v292_v1, %v291_v63 }
 0x196   :  { %s696_s9 = spop %695 }
 0x197   :  { %s127_s2 = ssub.f32 %s123_s6, %s696_s9  ;;  %s698_s3 = spop %697 }
 0x198   :  { %s159_s12 = sadd.f32 1e-08, %s698_s3  ;;  %s675_s6 = sld [smem:[#allocation7 + $0x4]] }
 0x199   :  { %s128_s13 = sadd.f32 0.2, %s127_s2 }
 0x19a   :  { %v160_v8 = vstv %s159_s12 }
 0x19b   :  { %s963_s14 = smax.f32 %s866_s10, %s128_s13  ;;  %766 = vrsqrt.f32 %v160_v8  ;;  %vm163_vm5 = vcmp.eq.f32.partialorder %v160_v8, inf  ;;  %v166_v14 = vand.u32 2147483648, %v160_v8  ;;  %vm165_vm6 = vcmp.eq.f32.partialorder %v160_v8, 0.0 }
 0x19c   :  { %p131_p7 = scmp.gt.f32.partialorder %s963_s14, 0.0  ;;  %s134_s15 = sadd.f32 %s963_s14, %s959_s11 }
 0x19e   :  { %p968_p8 = por %p131_p7, %p130_p6  ;;  %s349_s9 = scalar_lea.vmem %s1186_s4, %s675_s6 }
 0x19f   :  { %v350_v36 = vld [vmem:[%s349_s9] sm:$0x1] }
 0x1a0   :  { %v373_v37 = vsub.f32 %v346_v18, %v350_v36  ;;  %s135_s17 = scalar_select %p968_p8, 1, 0 }
 0x1a2   :  { %v374_v38 = vmul.f32 %v373_v37, %v373_v37  ;;  %s1005_s19 = scvt.s32.f32 %s135_s17 }
 0x1a4   :  { %v375_v39 = vsel %vm80_vm0, %v374_v38, 0.0 }
 0x1a5   :  { %v767_v11 = vpop.eup %766  ;;  %376 = vadd.xlane.f32.xlu1 %v375_v39 }
 0x1a6   :  { %v162_v13 = vmul.f32 %v767_v11, %v160_v8  ;;  %v309_v11 = vpop.xlane.xlu1 %308 }
 0x1a7   :  { %v310_v12 = vrot.slane %v309_v11, 4 }
 0x1a8   :  { %v164_v15 = vsel %vm163_vm5, %v160_v8, %v162_v13 }
 0x1a9   :  { %v167_v16 = vsel %vm165_vm6, %v166_v14, %v164_v15  ;;  %v311_v13 = vadd.f32 %v310_v12, %v309_v11 }
 0x1aa   :  { %699 = vpush %v167_v16 }
 0x1ab   :  { %701 = vpush %v179_v17  ;;  %v312_v15 = vrot.slane %v311_v13, 2 }
 0x1ad   :  { %v313_v16 = vadd.f32 %v312_v15, %v311_v13 }
 0x1af   :  { %v314_v18 = vrot.slane %v313_v16, 1 }
 0x1b1   :  { %v315_v23 = vadd.f32 %v314_v18, %v313_v16 }
 0x1db   :  { %s700_s26 = spop %699 }
 0x1dc   :  { %s192_s1 = ssub.f32 %s700_s26, %s979_s25  ;;  %s702_s0 = spop %701 }
 0x1dd   :  { %s181_s27 = sadd.f32 1e-08, %s702_s0  ;;  %s415_s0 = scalar_lea.vmem %s1186_s4, %s678_s22 }
 0x1de   :  { %s193_s28 = sadd.f32 0.2, %s192_s1  ;;  %v416_v54 = vld [vmem:[%s415_s0] sm:$0x1]  ;;  %s681_s26 = sld [smem:[#allocation2 + $0x6]] }
 0x1df   :  { %v182_v26 = vstv %s181_s27  ;;  %s1018_s27 = sld [smem:[#allocation8 + $0x2]]  ;;  %s682_s1 = sld [smem:[#allocation5 + $0x6]] }
 0x1e0   :  { %s983_s29 = smax.f32 %s866_s10, %s193_s28  ;;  %768 = vrsqrt.f32 %v182_v26  ;;  %vm185_vm7 = vcmp.eq.f32.partialorder %v182_v26, inf  ;;  %v188_v32 = vand.u32 2147483648, %v182_v26  ;;  %vm187_vm8 = vcmp.eq.f32.partialorder %v182_v26, 0.0 }
 0x1e1   :  { %s989_s30 = sadd.f32 %s983_s29, %s134_s15  ;;  %p198_p9 = scmp.gt.f32.partialorder %s983_s29, 0.0 }
 0x1ea   :  { %v769_v29 = vpop.eup %768 }
 0x1eb   :  { %v184_v31 = vmul.f32 %v769_v29, %v182_v26  ;;  %v355_v29 = vpop.xlane.xlu0 %354 }
 0x1ec   :  { %v356_v30 = vrot.slane %v355_v29, 4 }
 0x1ed   :  { %v186_v33 = vsel %vm185_vm7, %v182_v26, %v184_v31 }
 0x1ee   :  { %v189_v34 = vsel %vm187_vm8, %v188_v32, %v186_v33  ;;  %v357_v31 = vadd.f32 %v356_v30, %v355_v29 }
 0x1ef   :  { %703 = vpush %v189_v34 }
 0x1f0   :  { %705 = vpush %v225_v35  ;;  %v358_v33 = vrot.slane %v357_v31, 2 }
 0x1f2   :  { %v359_v34 = vadd.f32 %v358_v33, %v357_v31 }
 0x1f4   :  { %v360_v36 = vrot.slane %v359_v34, 1 }
 0x1f6   :  { %v361_v41 = vadd.f32 %v360_v36, %v359_v34 }
 0x220   :  { %s704_s2 = spop %703 }
 0x221   :  { %s195_s3 = ssub.f32 %s979_s25, %s704_s2  ;;  %s706_s11 = spop %705 }
 0x222   :  { %s227_s12 = sadd.f32 1e-08, %s706_s11  ;;  %s413_s25 = scalar_lea.vmem %s1186_s4, %s677_s16 }
 0x223   :  { %s196_s13 = sadd.f32 0.2, %s195_s3  ;;  %v414_v53 = vld [vmem:[%s413_s25] sm:$0x1]  ;;  %s679_s3 = sld [smem:[#allocation7 + $0x5]] }
 0x224   :  { %v228_v43 = vstv %s227_s12  ;;  %v419_v55 = vsub.f32 %v414_v53, %v416_v54 }
 0x225   :  { %s998_s14 = smax.f32 %s866_s10, %s196_s13  ;;  %770 = vrsqrt.f32 %v228_v43  ;;  %vm231_vm9 = vcmp.eq.f32.partialorder %v228_v43, inf  ;;  %v234_v49 = vand.u32 2147483648, %v228_v43  ;;  %vm233_vm10 = vcmp.eq.f32.partialorder %v228_v43, 0.0 }
 0x226   :  { %p199_p10 = scmp.gt.f32.partialorder %s998_s14, 0.0  ;;  %s202_s15 = sadd.f32 %s989_s30, %s998_s14  ;;  %v420_v56 = vmul.f32 %v419_v55, %v419_v55 }
 0x228   :  { %p200_p11 = por %p199_p10, %p198_p9  ;;  %v421_v57 = vsel %vm80_vm0, %v420_v56, 0.0 }
 0x229   :  { %422 = vadd.xlane.f32.xlu0 %v421_v57  ;;  %s417_s30 = scalar_lea.vmem %s1186_s4, %s679_s3 }
 0x22a   :  { %s203_s18 = scalar_select %p200_p11, 1, 0  ;;  %v418_v7 = vld [vmem:[%s417_s30] sm:$0x1] }
 0x22b   :  { %v441_v8 = vsub.f32 %v414_v53, %v418_v7  ;;  %s683_s30 = sld [smem:[#allocation7 + $0x6]] }
 0x22c   :  { %s1007_s20 = scvt.s32.f32 %s203_s18 }
 0x22d   :  { %v442_v9 = vmul.f32 %v441_v8, %v441_v8 }
 0x22e   :  { %s205_s21 = sadd.f32 %s1007_s20, %s1005_s19 }
 0x22f   :  { %v771_v46 = vpop.eup %770  ;;  %v443_v10 = vsel %vm80_vm0, %v442_v9, 0.0 }
 0x230   :  { %v230_v48 = vmul.f32 %v771_v46, %v228_v43  ;;  %444 = vadd.xlane.f32.xlu1 %v443_v10 }
 0x232   :  { %v232_v50 = vsel %vm231_vm9, %v228_v43, %v230_v48  ;;  %v377_v46 = vpop.xlane.xlu1 %376 }
 0x233   :  { %v235_v51 = vsel %vm233_vm10, %v234_v49, %v232_v50  ;;  %v378_v47 = vrot.slane %v377_v46, 4 }
 0x234   :  { %707 = vpush %v235_v51 }
 0x235   :  { %709 = vpush %v247_v52  ;;  %v379_v48 = vadd.f32 %v378_v47, %v377_v46 }
 0x237   :  { %v380_v50 = vrot.slane %v379_v48, 2 }
 0x239   :  { %v381_v51 = vadd.f32 %v380_v50, %v379_v48 }
 0x23b   :  { %v382_v53 = vrot.slane %v381_v51, 1 }
 0x23d   :  { %v383_v58 = vadd.f32 %v382_v53, %v381_v51 }
 0x265   :  { %s708_s28 = spop %707 }
 0x266   :  { %s260_s29 = ssub.f32 %s708_s28, %s1018_s27  ;;  %s710_s6 = spop %709 }
 0x267   :  { %s249_s7 = sadd.f32 1e-08, %s710_s6  ;;  %s481_s28 = scalar_lea.vmem %s1186_s4, %s681_s26 }
 0x268   :  { %s261_s8 = sadd.f32 0.2, %s260_s29  ;;  %v482_v24 = vld [vmem:[%s481_s28] sm:$0x1]  ;;  %s1054_s29 = sld [smem:[#allocation8 + $0x3]] }
 0x269   :  { %v250_v61 = vstv %s249_s7  ;;  %s686_s28 = sld [smem:[#allocation5 + $0x7]] }
 0x26a   :  { %s1022_s9 = smax.f32 %s866_s10, %s261_s8  ;;  %772 = vrsqrt.f32 %v250_v61  ;;  %vm253_vm11 = vcmp.eq.f32.partialorder %v250_v61, inf  ;;  %v256_v3 = vand.u32 2147483648, %v250_v61  ;;  %vm255_vm12 = vcmp.eq.f32.partialorder %v250_v61, 0.0 }
 0x26b   :  { %s1028_s2 = sadd.f32 %s1022_s9, %s202_s15  ;;  %p266_p12 = scmp.gt.f32.partialorder %s1022_s9, 0.0 }
 0x274   :  { %v773_v0 = vpop.eup %772 }
 0x275   :  { %v252_v2 = vmul.f32 %v773_v0, %v250_v61 }
 0x277   :  { %v254_v4 = vsel %vm253_vm11, %v250_v61, %v252_v2 }
 0x278   :  { %v257_v5 = vsel %vm255_vm12, %v256_v3, %v254_v4 }
 0x279   :  { %711 = vpush %v257_v5 }
 0x27a   :  { %713 = vpush %v293_v6 }
 0x2aa   :  { %s712_s13 = spop %711 }
 0x2ab   :  { %s263_s14 = ssub.f32 %s1018_s27, %s712_s13  ;;  %s714_s15 = spop %713 }
 0x2ac   :  { %s295_s17 = sadd.f32 1e-08, %s714_s15  ;;  %s685_s27 = sld [smem:[#allocation2 + $0x7]] }
 0x2ad   :  { %s264_s18 = sadd.f32 0.2, %s263_s14 }
 0x2ae   :  { %v296_v14 = vstv %s295_s17 }
 0x2af   :  { %s1037_s16 = smax.f32 %s866_s10, %s264_s18  ;;  %774 = vrsqrt.f32 %v296_v14  ;;  %vm299_vm13 = vcmp.eq.f32.partialorder %v296_v14, inf  ;;  %v302_v20 = vand.u32 2147483648, %v296_v14  ;;  %vm301_vm14 = vcmp.eq.f32.partialorder %v296_v14, 0.0 }
 0x2b0   :  { %p267_p13 = scmp.gt.f32.partialorder %s1037_s16, 0.0  ;;  %s270_s22 = sadd.f32 %s1028_s2, %s1037_s16 }
 0x2b1   :  { %s485_s2 = scalar_lea.vmem %s1186_s4, %s683_s30 }
 0x2b2   :  { %p268_p0 = por %p267_p13, %p266_p12  ;;  %v486_v42 = vld [vmem:[%s485_s2] sm:$0x1] }
 0x2b3   :  { %v509_v43 = vsub.f32 %v482_v24, %v486_v42 }
 0x2b4   :  { %s271_s23 = scalar_select %p268_p0, 1, 0 }
 0x2b5   :  { %v510_v44 = vmul.f32 %v509_v43, %v509_v43 }
 0x2b6   :  { %s272_s24 = scvt.s32.f32 %s271_s23  ;;  %v423_v0 = vpop.xlane.xlu0 %422 }
 0x2b7   :  { %v511_v45 = vsel %vm80_vm0, %v510_v44, 0.0  ;;  %v424_v1 = vrot.slane %v423_v0, 4 }
 0x2b8   :  { %s1045_s25 = sadd.f32 %s272_s24, %s205_s21  ;;  %s483_s21 = scalar_lea.vmem %s1186_s4, %s682_s1  ;;  %512 = vadd.xlane.f32.xlu1 %v511_v45 }
 0x2b9   :  { %v775_v17 = vpop.eup %774  ;;  %v484_v25 = vld [vmem:[%s483_s21] sm:$0x1]  ;;  %s549_s21 = scalar_lea.vmem %s1186_s4, %s685_s27  ;;  %v425_v2 = vadd.f32 %v424_v1, %v423_v0 }
 0x2ba   :  { %v298_v19 = vmul.f32 %v775_v17, %v296_v14  ;;  %v487_v26 = vsub.f32 %v482_v24, %v484_v25  ;;  %v550_v59 = vld [vmem:[%s549_s21] sm:$0x1]  ;;  %s1118_s21 = sld [smem:[#allocation8 + $0x5]] }
 0x2bb   :  { %v426_v4 = vrot.slane %v425_v2, 2 }
 0x2bc   :  { %v300_v21 = vsel %vm299_vm13, %v296_v14, %v298_v19  ;;  %v488_v27 = vmul.f32 %v487_v26, %v487_v26 }
 0x2bd   :  { %v303_v22 = vsel %vm301_vm14, %v302_v20, %v300_v21  ;;  %v427_v5 = vadd.f32 %v426_v4, %v425_v2  ;;  %v445_v17 = vpop.xlane.xlu1 %444 }
 0x2be   :  { %715 = vpush %v303_v22  ;;  %v489_v28 = vsel %vm80_vm0, %v488_v27, 0.0  ;;  %v446_v18 = vrot.slane %v445_v17, 4 }
 0x2bf   :  { %717 = vpush %v315_v23  ;;  %490 = vadd.xlane.f32.xlu0 %v489_v28  ;;  %v428_v7 = vrot.slane %v427_v5, 1 }
 0x2c0   :  { %v447_v19 = vadd.f32 %v446_v18, %v445_v17 }
 0x2c1   :  { %v429_v12 = vadd.f32 %v428_v7, %v427_v5 }
 0x2c2   :  { %v448_v21 = vrot.slane %v447_v19, 2 }
 0x2c4   :  { %v449_v22 = vadd.f32 %v448_v21, %v447_v19 }
 0x2c6   :  { %v450_v24 = vrot.slane %v449_v22, 1 }
 0x2c8   :  { %v451_v29 = vadd.f32 %v450_v24, %v449_v22 }
 0x2ef   :  { %s716_s6 = spop %715 }
 0x2f0   :  { %s328_s7 = ssub.f32 %s716_s6, %s1054_s29  ;;  %s718_s8 = spop %717 }
 0x2f1   :  { %s317_s9 = sadd.f32 1e-08, %s718_s8  ;;  %s1089_s8 = sld [smem:[#allocation8 + $0x4]] }
 0x2f2   :  { %s329_s3 = sadd.f32 0.2, %s328_s7  ;;  %s551_s7 = scalar_lea.vmem %s1186_s4, %s686_s28 }
 0x2f3   :  { %v318_v32 = vstv %s317_s9  ;;  %v552_v60 = vld [vmem:[%s551_s7] sm:$0x1] }
 0x2f4   :  { %s1058_s11 = smax.f32 %s866_s10, %s329_s3  ;;  %776 = vrsqrt.f32 %v318_v32  ;;  %vm321_vm15 = vcmp.eq.f32.partialorder %v318_v32, inf  ;;  %v324_v38 = vand.u32 2147483648, %v318_v32  ;;  %vm323_vm1 = vcmp.eq.f32.partialorder %v318_v32, 0.0 }
 0x2f5   :  { %s1064_s12 = sadd.f32 %s1058_s11, %s270_s22  ;;  %p334_p1 = scmp.gt.f32.partialorder %s1058_s11, 0.0  ;;  %v555_v61 = vsub.f32 %v550_v59, %v552_v60 }
 0x2f7   :  { %v556_v62 = vmul.f32 %v555_v61, %v555_v61 }
 0x2f9   :  { %v557_v63 = vsel %vm80_vm0, %v556_v62, 0.0 }
 0x2fa   :  { %558 = vadd.xlane.f32.xlu0 %v557_v63 }
 0x2fe   :  { %v777_v35 = vpop.eup %776 }
 0x2ff   :  { %v320_v37 = vmul.f32 %v777_v35, %v318_v32 }
 0x301   :  { %v322_v39 = vsel %vm321_vm15, %v318_v32, %v320_v37 }
 0x302   :  { %v325_v40 = vsel %vm323_vm1, %v324_v38, %v322_v39 }
 0x303   :  { %719 = vpush %v325_v40 }
 0x304   :  { %721 = vpush %v361_v41 }
 0x334   :  { %s720_s15 = spop %719 }
 0x335   :  { %s331_s17 = ssub.f32 %s1054_s29, %s720_s15  ;;  %s722_s18 = spop %721 }
 0x336   :  { %s363_s16 = sadd.f32 1e-08, %s722_s18  ;;  %s687_s15 = sld [smem:[#allocation7 + $0x7]] }
 0x337   :  { %s332_s22 = sadd.f32 0.2, %s331_s17 }
 0x338   :  { %v364_v49 = vstv %s363_s16 }
 0x339   :  { %s1073_s23 = smax.f32 %s866_s10, %s332_s22  ;;  %778 = vrsqrt.f32 %v364_v49  ;;  %vm367_vm2 = vcmp.eq.f32.partialorder %v364_v49, inf  ;;  %v370_v55 = vand.u32 2147483648, %v364_v49  ;;  %vm369_vm3 = vcmp.eq.f32.partialorder %v364_v49, 0.0 }
 0x33a   :  { %p335_p2 = scmp.gt.f32.partialorder %s1073_s23, 0.0  ;;  %s338_s24 = sadd.f32 %s1064_s12, %s1073_s23 }
 0x33c   :  { %p336_p3 = por %p335_p2, %p334_p1  ;;  %s553_s12 = scalar_lea.vmem %s1186_s4, %s687_s15 }
 0x33d   :  { %v554_v13 = vld [vmem:[%s553_s12] sm:$0x1]  ;;  %s1142_s12 = sld [smem:[#allocation8 + $0x6]] }
 0x33e   :  { %s339_s26 = scalar_select %p336_p3, 1, 0  ;;  %v577_v14 = vsub.f32 %v550_v59, %v554_v13 }
 0x340   :  { %s1078_s1 = scvt.s32.f32 %s339_s26  ;;  %v578_v15 = vmul.f32 %v577_v14, %v577_v14 }
 0x342   :  { %s341_s0 = sadd.f32 %s1078_s1, %s1045_s25  ;;  %v579_v16 = vsel %vm80_vm0, %v578_v15, 0.0 }
 0x343   :  { %v779_v52 = vpop.eup %778  ;;  %580 = vadd.xlane.f32.xlu1 %v579_v16 }
 0x344   :  { %v366_v54 = vmul.f32 %v779_v52, %v364_v49 }
 0x345   :  { %v513_v43 = vpop.xlane.xlu1 %512 }
 0x346   :  { %v368_v56 = vsel %vm367_vm2, %v364_v49, %v366_v54  ;;  %v514_v44 = vrot.slane %v513_v43, 4 }
 0x347   :  { %v371_v57 = vsel %vm369_vm3, %v370_v55, %v368_v56 }
 0x348   :  { %723 = vpush %v371_v57  ;;  %v515_v45 = vadd.f32 %v514_v44, %v513_v43 }
 0x349   :  { %725 = vpush %v383_v58 }
 0x34a   :  { %v516_v47 = vrot.slane %v515_v45, 2 }
 0x34c   :  { %v491_v30 = vpop.xlane.xlu0 %490  ;;  %v517_v48 = vadd.f32 %v516_v47, %v515_v45 }
 0x34d   :  { %v492_v31 = vrot.slane %v491_v30, 4 }
 0x34e   :  { %v518_v50 = vrot.slane %v517_v48, 1 }
 0x34f   :  { %v493_v32 = vadd.f32 %v492_v31, %v491_v30 }
 0x350   :  { %v519_v55 = vadd.f32 %v518_v50, %v517_v48 }
 0x351   :  { %v494_v34 = vrot.slane %v493_v32, 2 }
 0x353   :  { %v495_v35 = vadd.f32 %v494_v34, %v493_v32 }
 0x355   :  { %v496_v37 = vrot.slane %v495_v35, 1 }
 0x357   :  { %v497_v42 = vadd.f32 %v496_v37, %v495_v35 }
 0x379   :  { %s724_s9 = spop %723 }
 0x37a   :  { %s396_s3 = ssub.f32 %s724_s9, %s1089_s8  ;;  %s726_s11 = spop %725 }
 0x37b   :  { %s385_s30 = sadd.f32 1e-08, %s726_s11 }
 0x37c   :  { %s397_s13 = sadd.f32 0.2, %s396_s3 }
 0x37d   :  { %v386_v3 = vstv %s385_s30 }
 0x37e   :  { %s1093_s14 = smax.f32 %s866_s10, %s397_s13  ;;  %780 = vrsqrt.f32 %v386_v3  ;;  %vm389_vm4 = vcmp.eq.f32.partialorder %v386_v3, inf  ;;  %v392_v9 = vand.u32 2147483648, %v386_v3  ;;  %vm391_vm5 = vcmp.eq.f32.partialorder %v386_v3, 0.0 }
 0x37f   :  { %s1099_s2 = sadd.f32 %s1093_s14, %s338_s24  ;;  %p402_p4 = scmp.gt.f32.partialorder %s1093_s14, 0.0 }
 0x387   :  { %v559_v56 = vpop.xlane.xlu0 %558 }
 0x388   :  { %v781_v6 = vpop.eup %780  ;;  %v560_v57 = vrot.slane %v559_v56, 4 }
 0x389   :  { %v388_v8 = vmul.f32 %v781_v6, %v386_v3 }
 0x38a   :  { %v561_v58 = vadd.f32 %v560_v57, %v559_v56 }
 0x38b   :  { %v390_v10 = vsel %vm389_vm4, %v386_v3, %v388_v8 }
 0x38c   :  { %v393_v11 = vsel %vm391_vm5, %v392_v9, %v390_v10  ;;  %v562_v60 = vrot.slane %v561_v58, 2 }
 0x38d   :  { %727 = vpush %v393_v11 }
 0x38e   :  { %729 = vpush %v429_v12  ;;  %v563_v61 = vadd.f32 %v562_v60, %v561_v58 }
 0x390   :  { %v564_v63 = vrot.slane %v563_v61, 1 }
 0x392   :  { %v565_v4 = vadd.f32 %v564_v63, %v563_v61 }
 0x3be   :  { %s728_s16 = spop %727 }
 0x3bf   :  { %s399_s22 = ssub.f32 %s1089_s8, %s728_s16  ;;  %s730_s23 = spop %729 }
 0x3c0   :  { %s431_s24 = sadd.f32 1e-08, %s730_s23 }
 0x3c1   :  { %s400_s26 = sadd.f32 0.2, %s399_s22 }
 0x3c2   :  { %v432_v20 = vstv %s431_s24 }
 0x3c3   :  { %s1108_s4 = smax.f32 %s866_s10, %s400_s26  ;;  %782 = vrsqrt.f32 %v432_v20  ;;  %vm435_vm0 = vcmp.eq.f32.partialorder %v432_v20, inf  ;;  %v438_v26 = vand.u32 2147483648, %v432_v20  ;;  %vm437_vm6 = vcmp.eq.f32.partialorder %v432_v20, 0.0 }
 0x3c4   :  { %p403_p5 = scmp.gt.f32.partialorder %s1108_s4, 0.0  ;;  %s406_s27 = sadd.f32 %s1099_s2, %s1108_s4 }
 0x3c6   :  { %p404_p6 = por %p403_p5, %p402_p4 }
 0x3c8   :  { %s407_s28 = scalar_select %p404_p6, 1, 0 }
 0x3ca   :  { %s408_s19 = scvt.s32.f32 %s407_s28 }
 0x3cc   :  { %s1116_s20 = sadd.f32 %s408_s19, %s341_s0 }
 0x3cd   :  { %v783_v23 = vpop.eup %782 }
 0x3ce   :  { %v434_v25 = vmul.f32 %v783_v23, %v432_v20 }
 0x3d0   :  { %v436_v27 = vsel %vm435_vm0, %v432_v20, %v434_v25  ;;  %v581_v5 = vpop.xlane.xlu1 %580 }
 0x3d1   :  { %v439_v28 = vsel %vm437_vm6, %v438_v26, %v436_v27  ;;  %v582_v6 = vrot.slane %v581_v5, 4 }
 0x3d2   :  { %731 = vpush %v439_v28 }
 0x3d3   :  { %733 = vpush %v451_v29  ;;  %v583_v7 = vadd.f32 %v582_v6, %v581_v5 }
 0x3d5   :  { %v584_v9 = vrot.slane %v583_v7, 2 }
 0x3d7   :  { %v585_v10 = vadd.f32 %v584_v9, %v583_v7 }
 0x3d9   :  { %v586_v12 = vrot.slane %v585_v10, 1 }
 0x3db   :  { %v587_v17 = vadd.f32 %v586_v12, %v585_v10 }
 0x403   :  { %s732_s25 = spop %731 }
 0x404   :  { %s464_s1 = ssub.f32 %s732_s25, %s1118_s21  ;;  %s734_s0 = spop %733 }
 0x405   :  { %s453_s29 = sadd.f32 1e-08, %s734_s0 }
 0x406   :  { %s465_s6 = sadd.f32 0.2, %s464_s1 }
 0x407   :  { %v454_v33 = vstv %s453_s29 }
 0x408   :  { %s1122_s7 = smax.f32 %s866_s10, %s465_s6  ;;  %784 = vrsqrt.f32 %v454_v33  ;;  %vm457_vm7 = vcmp.eq.f32.partialorder %v454_v33, inf  ;;  %v460_v39 = vand.u32 2147483648, %v454_v33  ;;  %vm459_vm8 = vcmp.eq.f32.partialorder %v454_v33, 0.0 }
 0x409   :  { %s1128_s8 = sadd.f32 %s1122_s7, %s406_s27  ;;  %p470_p7 = scmp.gt.f32.partialorder %s1122_s7, 0.0 }
 0x412   :  { %v785_v36 = vpop.eup %784 }
 0x413   :  { %v456_v38 = vmul.f32 %v785_v36, %v454_v33 }
 0x415   :  { %v458_v40 = vsel %vm457_vm7, %v454_v33, %v456_v38 }
 0x416   :  { %v461_v41 = vsel %vm459_vm8, %v460_v39, %v458_v40 }
 0x417   :  { %735 = vpush %v461_v41 }
 0x418   :  { %737 = vpush %v497_v42 }
 0x448   :  { %s736_s9 = spop %735 }
 0x449   :  { %s467_s3 = ssub.f32 %s1118_s21, %s736_s9  ;;  %s738_s11 = spop %737 }
 0x44a   :  { %s499_s30 = sadd.f32 1e-08, %s738_s11  ;;  %s688_s9 = sld [smem:[#allocation8 + $0x7]] }
 0x44b   :  { %s468_s13 = sadd.f32 0.2, %s467_s3 }
 0x44c   :  { %v500_v46 = vstv %s499_s30 }
 0x44d   :  { %s1133_s14 = smax.f32 %s866_s10, %s468_s13  ;;  %786 = vrsqrt.f32 %v500_v46  ;;  %vm503_vm9 = vcmp.eq.f32.partialorder %v500_v46, inf  ;;  %v506_v52 = vand.u32 2147483648, %v500_v46  ;;  %vm505_vm10 = vcmp.eq.f32.partialorder %v500_v46, 0.0 }
 0x44e   :  { %p471_p8 = scmp.gt.f32.partialorder %s1133_s14, 0.0  ;;  %s474_s2 = sadd.f32 %s1128_s8, %s1133_s14 }
 0x450   :  { %p472_p9 = por %p471_p8, %p470_p7 }
 0x452   :  { %s475_s15 = scalar_select %p472_p9, 1, 0 }
 0x454   :  { %s1138_s17 = scvt.s32.f32 %s475_s15 }
 0x456   :  { %s477_s18 = sadd.f32 %s1138_s17, %s1116_s20 }
 0x457   :  { %v787_v49 = vpop.eup %786 }
 0x458   :  { %v502_v51 = vmul.f32 %v787_v49, %v500_v46 }
 0x45a   :  { %v504_v53 = vsel %vm503_vm9, %v500_v46, %v502_v51 }
 0x45b   :  { %v507_v54 = vsel %vm505_vm10, %v506_v52, %v504_v53 }
 0x45c   :  { %739 = vpush %v507_v54 }
 0x45d   :  { %741 = vpush %v519_v55 }
 0x48d   :  { %s740_s16 = spop %739 }
 0x48e   :  { %s532_s22 = ssub.f32 %s740_s16, %s1142_s12  ;;  %s742_s23 = spop %741 }
 0x48f   :  { %s521_s24 = sadd.f32 1e-08, %s742_s23 }
 0x490   :  { %s533_s26 = sadd.f32 0.2, %s532_s22 }
 0x491   :  { %v522_v59 = vstv %s521_s24 }
 0x492   :  { %s1146_s4 = smax.f32 %s866_s10, %s533_s26  ;;  %788 = vrsqrt.f32 %v522_v59  ;;  %vm525_vm11 = vcmp.eq.f32.partialorder %v522_v59, inf  ;;  %v528_v1 = vand.u32 2147483648, %v522_v59  ;;  %vm527_vm12 = vcmp.eq.f32.partialorder %v522_v59, 0.0  ;;  %s867_s26 = smov 1.0  }
 0x493   :  { %s1152_s27 = sadd.f32 %s1146_s4, %s474_s2  ;;  %p538_p10 = scmp.gt.f32.partialorder %s1146_s4, 0.0 }
 0x49c   :  { %v789_v62 = vpop.eup %788 }
 0x49d   :  { %v524_v0 = vmul.f32 %v789_v62, %v522_v59 }
 0x49f   :  { %v526_v2 = vsel %vm525_vm11, %v522_v59, %v524_v0 }
 0x4a0   :  { %v529_v3 = vsel %vm527_vm12, %v528_v1, %v526_v2 }
 0x4a1   :  { %743 = vpush %v529_v3 }
 0x4a2   :  { %745 = vpush %v565_v4 }
 0x4d2   :  { %s744_s28 = spop %743 }
 0x4d3   :  { %s535_s19 = ssub.f32 %s1142_s12, %s744_s28  ;;  %s746_s21 = spop %745 }
 0x4d4   :  { %s567_s25 = sadd.f32 1e-08, %s746_s21 }
 0x4d5   :  { %s536_s1 = sadd.f32 0.2, %s535_s19 }
 0x4d6   :  { %v568_v8 = vstv %s567_s25  ;;  %s844_s25 = scalar_lea.hbm %s1187_s5, 16 }
 0x4d7   :  { %s1157_s0 = smax.f32 %s866_s10, %s536_s1  ;;  %790 = vrsqrt.f32 %v568_v8  ;;  %vm571_vm13 = vcmp.eq.f32.partialorder %v568_v8, inf  ;;  %v574_v14 = vand.u32 2147483648, %v568_v8  ;;  %vm573_vm14 = vcmp.eq.f32.partialorder %v568_v8, 0.0  ;;  %p845_p2 = scmp.ne.s32.totalorder %s1187_s5, %s844_s25 }
 0x4d8   :  { %p539_p11 = scmp.gt.f32.partialorder %s1157_s0, 0.0  ;;  %s542_s29 = sadd.f32 %s1152_s27, %s1157_s0 }
 0x4d9   :  { %p848_p3 = scmp.lt.u32.totalorder %s844_s25, %s1187_s5 }
 0x4da   :  { %p540_p12 = por %p539_p11, %p538_p10 }
 0x4db   :  { %p850_p4 = pnand %p848_p3, %p845_p2 }
 0x4dc   :  { %s543_s6 = scalar_select %p540_p12, 1, 0 }
 0x4de   :  { %s544_s7 = scvt.s32.f32 %s543_s6 }
 0x4e0   :  { %s1165_s8 = sadd.f32 %s544_s7, %s477_s18 }
 0x4e1   :  { %v791_v11 = vpop.eup %790 }
 0x4e2   :  { %v570_v13 = vmul.f32 %v791_v11, %v568_v8 }
 0x4e4   :  { %v572_v15 = vsel %vm571_vm13, %v568_v8, %v570_v13 }
 0x4e5   :  { %v575_v16 = vsel %vm573_vm14, %v574_v14, %v572_v15 }
 0x4e6   :  { %747 = vpush %v575_v16 }
 0x4e7   :  { %749 = vpush %v587_v17 }
 0x517   :  { %s748_s3 = spop %747 }
 0x518   :  { %s600_s11 = ssub.f32 %s748_s3, %s688_s9  ;;  %s750_s30 = spop %749 }
 0x519   :  { %s589_s13 = sadd.f32 1e-08, %s750_s30 }
 0x51a   :  { %s601_s14 = sadd.f32 0.2, %s600_s11 }
 0x51b   :  { %v590_v18 = vstv %s589_s13 }
 0x51c   :  { %s602_s20 = smax.f32 %s866_s10, %s601_s14  ;;  %792 = vrsqrt.f32 %v590_v18  ;;  %vm593_vm15 = vcmp.eq.f32.partialorder %v590_v18, inf  ;;  %v596_v21 = vand.u32 2147483648, %v590_v18  ;;  %vm595_vm1 = vcmp.eq.f32.partialorder %v590_v18, 0.0 }
 0x51d   :  { %s609_s2 = sadd.f32 %s602_s20, %s542_s29  ;;  %p606_p13 = scmp.gt.f32.partialorder %s602_s20, 0.0 }
 0x526   :  { %v793_v19 = vpop.eup %792 }
 0x527   :  { %v592_v20 = vmul.f32 %v793_v19, %v590_v18 }
 0x529   :  { %v594_v22 = vsel %vm593_vm15, %v590_v18, %v592_v20 }
 0x52a   :  { %v597_v23 = vsel %vm595_vm1, %v596_v21, %v594_v22 }
 0x52b   :  { %751 = vpush %v597_v23 }
 0x55c   :  { %s752_s15 = spop %751 }
 0x55d   :  { %s603_s17 = ssub.f32 %s688_s9, %s752_s15 }
 0x55f   :  { %s604_s18 = sadd.f32 0.2, %s603_s17 }
 0x561   :  { %s605_s12 = smax.f32 %s866_s10, %s604_s18 }
 0x562   :  { %p607_p0 = scmp.gt.f32.partialorder %s605_s12, 0.0  ;;  %s610_s16 = sadd.f32 %s609_s2, %s605_s12 }
 0x564   :  { %p608_p1 = por %p607_p0, %p606_p13 }
 0x566   :  { %s611_s22 = scalar_select %p608_p1, 1, 0 }
 0x568   :  { %s612_s23 = scvt.s32.f32 %s611_s22 }
 0x56a   :  { %s613_s24 = sadd.f32 %s612_s23, %s1165_s8 }
 0x56c   :  { %s614_s4 = smax.f32 %s867_s26, %s613_s24 }
 0x56d   :  { %v615_v24 = vstv %s614_s4 }
 0x56e   :  { %794 = vrcp.f32 %v615_v24 }
 0x578   :  { %v795_v25 = vpop.eup %794 }
 0x579   :  { %753 = vpush %v795_v25 }
 0x5aa   :  { %s754_s27 = spop %753 }
 0x5ab   :  { %s618_s28 = smul.f32 %s754_s27, %s610_s16 }
 0x5ad   :  { %620 = sst [smem:[#allocation10]] %s618_s28 }
 0x5ae   :  { %853 = shalt.err (!%p850_p4)
}
 0x5af   :  { %s868_s6 = smov [#allocation10]  }
 0x5b0   :  { %628 = dma.smem_to_hbm %s868_s6, 16, %s1187_s5, [#allocation3]  }
 0x5b1   :  { %860 = dma.done.wait [#allocation3], 16  }
 0x5b2   :  { %861 = vsyncadd [#allocation3], 4294967280 }
 0x5b3   :  { %632 = sfence }
 0x5b4   :  { %633 = vsyncpa [#allocation3], 1 }
 0x5b5   :  { %634 = vsyncpa [#allocation4], 1 }
 0x5b6   :  { %635 = vsyncpa [#allocation6], 1 }
 0x5b7   :  { %636 = vsyncpa [#allocation9], 1 }

</bundles_post_ra>
